<compile_context>
chip_gen: v7x
topology: tpu7x:2x2x1
jax: 0.10.0
libtpu: 0.0.40
codegen_flags: <defaults>
</compile_context>

<pallas_src>
import jax
import jax.numpy as jnp
from jax.experimental import pallas as pl
from jax.experimental.pallas import tpu as pltpu

LANE = 128          # lane width: classifier output dim (3) padded to this
TB_MAX = 512        # max batch rows per block (multiple of 256 -> MXU-M aligned)
NUM_CLASSES = 3     # nn.Linear(768, 3)


def cls_classifier_kernel(x_ref, w_ref, b_ref, o_ref):
    # x_ref: (tb, H) bf16 CLS rows
    # w_ref: (H, 128) bf16 pre-transposed + lane-padded classifier weight
    # b_ref: (1, 128) f32 lane-padded bias
    # o_ref: (tb, 128) f32 lane-dense logits
    o_ref[...] = (
        jnp.dot(x_ref[...], w_ref[...], preferred_element_type=jnp.float32)
        + b_ref[...]
    )


def prepare_classifier_params(weight, bias):
    """One-time (init-time) prep, hoisted out of the forward path.

    weight: (C, H) f32 (nn.Linear weight), bias: (C,) f32.
    Returns (H, 128) bf16 pre-transposed/padded weight and (1, 128) f32 bias.
    """
    C, H = weight.shape
    w_t = (
        jnp.zeros((H, LANE), jnp.bfloat16)
        .at[:, :C]
        .set(weight.T.astype(jnp.bfloat16))
    )
    b_p = jnp.zeros((1, LANE), jnp.float32).at[0, :C].set(bias)
    return w_t, b_p


def classify_cls(x_cls, w_t, b_p):
    """x_cls: (B, H) CLS embeddings; w_t: (H, 128) bf16; b_p: (1, 128) f32."""
    B, H = x_cls.shape
    x_bf16 = x_cls.astype(jnp.bfloat16)

    if B <= TB_MAX:
        # Whole batch in one MXU-filling block.  Ragged B is fine because the
        # block shape equals the full array dims; no explicit pad copy needed.
        tb, grid = B, (1,)
    else:
        # 512-row tiles; Pallas masks the ragged tail block automatically.
        tb, grid = TB_MAX, (pl.cdiv(B, TB_MAX),)

    out = pl.pallas_call(
        cls_classifier_kernel,
        out_shape=jax.ShapeDtypeStruct((B, LANE), jnp.float32),
        grid=grid,
        in_specs=[
            pl.BlockSpec((tb, H), lambda i: (i, 0)),
            pl.BlockSpec((H, LANE), lambda i: (0, 0)),
            pl.BlockSpec((1, LANE), lambda i: (0, 0)),
        ],
        out_specs=pl.BlockSpec((tb, LANE), lambda i: (i, 0)),
        compiler_params=pltpu.CompilerParams(
            dimension_semantics=("parallel",),
        ),
    )(x_bf16, w_t, b_p)

    return out[:, :NUM_CLASSES]


def embedding_standin(input_ids, tok_emb, pos_emb, mix):
    """Deterministic stand-in for the frozen BERT encoder (plain-JAX glue).

    Produces a (B, S, H) 'last_hidden_state' from integer token ids.
    """
    h = tok_emb[input_ids] + pos_emb[None, : input_ids.shape[1], :]
    h = jnp.tanh(h @ mix)  # single deterministic mixing layer
    mu = h.mean(-1, keepdims=True)
    var = ((h - mu) ** 2).mean(-1, keepdims=True)
    return (h - mu) / jnp.sqrt(var + 1e-5)


@jax.jit
def model_forward(input_ids, params):
    last_hidden_state = embedding_standin(
        input_ids, params["tok_emb"], params["pos_emb"], params["mix"]
    )
    # CLS extraction fused into the same jit region: only (B, H) reaches the
    # Pallas kernel; the full (B, S, H) tensor is never DMA'd for classification.
    x_cls = last_hidden_state[:, 0, :]
    return classify_cls(x_cls, params["cls_w_t"], params["cls_b_p"])


if __name__ == "__main__":
    B, S, H, V = 2, 8, 768, 32  # small batch/seq; hidden matches Linear(768, 3)
    C = NUM_CLASSES

    key = jax.random.PRNGKey(0)
    k_tok, k_pos, k_mix, k_w, k_b, k_ids = jax.random.split(key, 6)

    # nn.Linear(768, 3): weight (3, 768), bias (3,)
    cls_w = jax.random.normal(k_w, (C, H), jnp.float32) * 0.02
    cls_b = jax.random.normal(k_b, (C,), jnp.float32) * 0.02
    # Hoisted one-time classifier-head prep (not in the per-call path).
    cls_w_t, cls_b_p = prepare_classifier_params(cls_w, cls_b)

    params = {
        "tok_emb": jax.random.normal(k_tok, (V, H), jnp.float32) * 0.02,
        "pos_emb": jax.random.normal(k_pos, (S, H), jnp.float32) * 0.02,
        "mix": jax.random.normal(k_mix, (H, H), jnp.float32) * (1.0 / jnp.sqrt(H)),
        "cls_w_t": cls_w_t,
        "cls_b_p": cls_b_p,
    }

    input_ids = jax.random.randint(k_ids, (B, S), 0, V, dtype=jnp.int32)

    out = model_forward(input_ids, params)
    jax.block_until_ready(out)

    # Cross-check the Pallas classifier against plain JAX with matching bf16
    # operand rounding (kernel uses bf16 operands + f32 accumulation).
    hs = embedding_standin(
        input_ids, params["tok_emb"], params["pos_emb"], params["mix"]
    )
    x_cls_bf16 = hs[:, 0, :].astype(jnp.bfloat16)
    ref = (
        jnp.dot(x_cls_bf16, cls_w_t[:, :C], preferred_element_type=jnp.float32)
        + cls_b
    )
    assert out.shape == (B, C)
    assert jnp.allclose(out, ref, atol=1e-3, rtol=1e-3)

    print("KERNEL_OK")
</pallas_src>

<mosaic_0001>
module attributes {stable_mosaic.version = 11 : i64} {
  func.func @cls_classifier_kernel(%arg0: i32, %arg1: memref<2x768xbf16, #tpu.memory_space<vmem>>, %arg2: memref<768x128xbf16, #tpu.memory_space<vmem>>, %arg3: memref<1x128xf32, #tpu.memory_space<vmem>>, %arg4: memref<2x128xf32, #tpu.memory_space<vmem>>) attributes {dimension_semantics = [#tpu.dimension_semantics<parallel>], iteration_bounds = array<i64: 1>, scalar_prefetch = 0 : i64, scratch_operands = 0 : i64, tpu.core_type = #tpu.core_type<tc>, window_params = [{transform_indices = @transform_0, window_bounds = array<i64: 2, 768>}, {pipeline_mode = #tpu.pipeline_mode<synchronous>, transform_indices = @transform_1, window_bounds = array<i64: 768, 128>}, {pipeline_mode = #tpu.pipeline_mode<synchronous>, transform_indices = @transform_2, window_bounds = array<i64: 1, 128>}, {transform_indices = @transform_3, window_bounds = array<i64: 2, 128>}]} {
    %c0 = arith.constant 0 : index
    %c0_0 = arith.constant 0 : index
    %0 = vector.load %arg1[%c0, %c0_0] : memref<2x768xbf16, #tpu.memory_space<vmem>>, vector<2x768xbf16>
    %c0_1 = arith.constant 0 : index
    %c0_2 = arith.constant 0 : index
    %1 = vector.load %arg2[%c0_1, %c0_2] : memref<768x128xbf16, #tpu.memory_space<vmem>>, vector<768x128xbf16>
    %cst = arith.constant dense<0.000000e+00> : vector<2x128xf32>
    %2 = tpu.matmul %0, %1, %cst {dimension_numbers = #tpu.dot_dimension_numbers<[1], [0], [0], [1], [0, 0, 1, 1], [], []>} : vector<2x768xbf16>, vector<768x128xbf16>, vector<2x128xf32> -> vector<2x128xf32>
    %c0_3 = arith.constant 0 : index
    %c0_4 = arith.constant 0 : index
    %3 = vector.load %arg3[%c0_3, %c0_4] : memref<1x128xf32, #tpu.memory_space<vmem>>, vector<1x128xf32>
    %4 = vector.broadcast %3 : vector<1x128xf32> to vector<2x128xf32>
    %5 = arith.addf %2, %4 : vector<2x128xf32>
    %c0_5 = arith.constant 0 : index
    %c0_6 = arith.constant 0 : index
    %6 = vector.load %arg4[%c0_5, %c0_6] : memref<2x128xf32, #tpu.memory_space<vmem>>, vector<2x128xf32>
    tpu.vector_store %arg4[%c0_5, %c0_6], %5 {strides = array<i32>} : memref<2x128xf32, #tpu.memory_space<vmem>>, vector<2x128xf32>,
    return
  }
  func.func @transform_0(%arg0: i32) -> (i32, i32) {
    %c0_i32 = arith.constant 0 : i32
    %c0_i32_0 = arith.constant 0 : i32
    return %arg0, %c0_i32 : i32, i32
  }
  func.func @transform_1(%arg0: i32) -> (i32, i32) {
    %c0_i32 = arith.constant 0 : i32
    %c0_i32_0 = arith.constant 0 : i32
    %c0_i32_1 = arith.constant 0 : i32
    return %c0_i32, %c0_i32_0 : i32, i32
  }
  func.func @transform_2(%arg0: i32) -> (i32, i32) {
    %c0_i32 = arith.constant 0 : i32
    %c0_i32_0 = arith.constant 0 : i32
    %c0_i32_1 = arith.constant 0 : i32
    return %c0_i32, %c0_i32_0 : i32, i32
  }
  func.func @transform_3(%arg0: i32) -> (i32, i32) {
    %c0_i32 = arith.constant 0 : i32
    %c0_i32_0 = arith.constant 0 : i32
    return %arg0, %c0_i32 : i32, i32
  }
}

</mosaic_0001>

<bundles_post_ra>
// kernel: model_forward.1
= control target key start
LH: loop header
LB: loop body
LE: loop exit
PB: predicated region body
PF: predicated region fallthrough
CT: control target
= control target key end

     0   :  { %v125_v29 = vlaneseq  ;;  %v787_v33 = vmov 1966171168   ;;  %s971_s0 = inlined_call_operand.vmem [shape: bf16[2,768], index: 0, kind: input, shape index: {}]   ;;  %s972_s1 = inlined_call_operand.vmem [shape: bf16[768,128], index: 1, kind: input, shape index: {}]   ;;  %s973_s2 = inlined_call_operand.vmem [shape: f32[1,128], index: 2, kind: input, shape index: {}]   ;;  %s974_s3 = inlined_call_operand.hbm [shape: f32[2,128], index: 3, kind: output, shape index: {}]  }
   0x1   :  { %v714_v0 = vld [vmem:[%s972_s1 + $0x40] sm:$0xff]   ;;  %v718_v4 = vld [vmem:[%s972_s1 + $0x48] sm:$0xff]   ;;  %v722_v8 = vld [vmem:[%s972_s1 + $0x50] sm:$0xff]   ;;  %v123_v34 = vunpack.c.l.s4 %v787_v33 }
   0x2   :  { %v715_v1 = vld [vmem:[%s972_s1] sm:$0xff]   ;;  %646 = vmatprep.subr.bf16.mxu0 %v714_v0  ;;  %v719_v5 = vld [vmem:[%s972_s1 + $0x8] sm:$0xff]   ;;  %v723_v9 = vld [vmem:[%s972_s1 + $0x10] sm:$0xff]   ;;  %v126_v35 = vshrl.u32 %v125_v29, 7 }
   0x3   :  { %v716_v2 = vld [vmem:[%s972_s1 + $0xc0] sm:$0xff]   ;;  %647 = vmatpush3.bf16.msra.mxu0 %v715_v1  ;;  %v720_v6 = vld [vmem:[%s972_s1 + $0xc8] sm:$0xff]   ;;  %v724_v10 = vld [vmem:[%s972_s1 + $0xd0] sm:$0xff]   ;;  %v124_v39 = vunpack.c.0.s8 %v123_v34 }
   0x4   :  { %v717_v3 = vld [vmem:[%s972_s1 + $0x80] sm:$0xff]   ;;  %668 = vmatprep.subr.bf16.mxu1 %v716_v2  ;;  %648 = vmatprep.subr.bf16.mxu0 %v718_v4  ;;  %v721_v7 = vld [vmem:[%s972_s1 + $0x88] sm:$0xff]   ;;  %v725_v11 = vld [vmem:[%s972_s1 + $0x90] sm:$0xff]  }
   0x5   :  { %669 = vmatpush3.bf16.msra.mxu1 %v717_v3  ;;  %v726_v12 = vld [vmem:[%s972_s1 + $0x58] sm:$0xff]   ;;  %v730_v16 = vld [vmem:[%s972_s1 + $0x60] sm:$0xff]   ;;  %v734_v20 = vld [vmem:[%s972_s1 + $0x68] sm:$0xff]   ;;  %v127_v40 = vsub.s32 %v124_v39, %v126_v35 }
   0x6   :  { %670 = vmatprep.subr.bf16.mxu1 %v720_v6  ;;  %v727_v13 = vld [vmem:[%s972_s1 + $0x18] sm:$0xff]   ;;  %v731_v17 = vld [vmem:[%s972_s1 + $0x20] sm:$0xff]   ;;  %v735_v21 = vld [vmem:[%s972_s1 + $0x28] sm:$0xff]  }
   0x7   :  { %649 = vmatpush3.bf16.msra.mxu0 %v719_v5  ;;  %v728_v14 = vld [vmem:[%s972_s1 + $0xd8] sm:$0xff]   ;;  %v732_v18 = vld [vmem:[%s972_s1 + $0xe0] sm:$0xff]   ;;  %v736_v22 = vld [vmem:[%s972_s1 + $0xe8] sm:$0xff]  }
   0x8   :  { %650 = vmatprep.subr.bf16.mxu0 %v722_v8  ;;  %v729_v15 = vld [vmem:[%s972_s1 + $0x98] sm:$0xff]   ;;  %v733_v19 = vld [vmem:[%s972_s1 + $0xa0] sm:$0xff]   ;;  %v737_v23 = vld [vmem:[%s972_s1 + $0xa8] sm:$0xff]  }
   0x9   :  { %671 = vmatpush3.bf16.msra.mxu1 %v721_v7  ;;  %v738_v24 = vld [vmem:[%s972_s1 + $0x70] sm:$0xff]   ;;  %v742_v28 = vld [vmem:[%s972_s1 + $0x78] sm:$0xff]   ;;  %v16_v32 = vld [vmem:[%s971_s0] sm:$0x3f] }
   0xa   :  { %672 = vmatprep.subr.bf16.mxu1 %v724_v10  ;;  %v739_v25 = vld [vmem:[%s972_s1 + $0x30] sm:$0xff]   ;;  %v743_v30 = vld [vmem:[%s972_s1 + $0x38] sm:$0xff]   ;;  %v747_v37 = vld [vmem:[%s972_s1 + $0x140] sm:$0xff]   ;;  %v121_v38 = vcombine.high %v16_v32, %v16_v32  ;;  %v128_v41 = vrot.slane %v16_v32, %v127_v40 }
   0xb   :  { %651 = vmatpush3.bf16.msra.mxu0 %v723_v9  ;;  %v740_v26 = vld [vmem:[%s972_s1 + $0xf0] sm:$0xff]   ;;  %v744_v31 = vld [vmem:[%s972_s1 + $0xf8] sm:$0xff]   ;;  %v748_v47 = vld [vmem:[%s972_s1 + $0x100] sm:$0xff]  }
   0xc   :  { %652 = vmatprep.subr.bf16.mxu0 %v726_v12  ;;  %v741_v27 = vld [vmem:[%s972_s1 + $0xb0] sm:$0xff]   ;;  %v746_v36 = vld [vmem:[%s972_s1 + $0xb8] sm:$0xff]   ;;  %v135_v42 = vrot.slane %v121_v38, %v127_v40  ;;  %v136_v43 = vcombine.high %v128_v41, %v128_v41  ;;  %v144_v44 = vrot.slane %v128_v41, %v127_v40  ;;  %v749_v49 = vld [vmem:[%s972_s1 + $0x148] sm:$0xff]  }
   0xd   :  { %673 = vmatpush3.bf16.msra.mxu1 %v725_v11  ;;  %v750_v52 = vld [vmem:[%s972_s1 + $0x108] sm:$0xff]   ;;  %v751_v53 = vld [vmem:[%s972_s1 + $0x150] sm:$0xff]  }
   0xe   :  { %674 = vmatprep.subr.bf16.mxu1 %v728_v14  ;;  %v137_v45 = vcombine.high %v135_v42, %v135_v42  ;;  %v158_v46 = vrot.slane %v136_v43, %v127_v40  ;;  %v166_v48 = vcombine.high %v144_v44, %v144_v44 }
   0xf   :  { %653 = vmatpush3.bf16.msra.mxu0 %v727_v13 }
  0x10   :  { %654 = vmatprep.subr.bf16.mxu0 %v730_v16  ;;  %494 = vmatprep.mubr.bf16.mxu0 %v158_v46  ;;  %v167_v50 = vcombine.high %v158_v46, %v158_v46  ;;  %v165_v51 = vrot.slane %v137_v45, %v127_v40 }
  0x11   :  { %675 = vmatpush3.bf16.msra.mxu1 %v729_v15 }
  0x12   :  { %676 = vmatprep.subr.bf16.mxu1 %v732_v18  ;;  %534 = vmatprep.mubr.bf16.mxu1 %v167_v50 }
  0x13   :  { %655 = vmatpush3.bf16.msra.mxu0 %v731_v17 }
  0x14   :  { %656 = vmatprep.subr.bf16.mxu0 %v734_v20 }
  0x15   :  { %677 = vmatpush3.bf16.msra.mxu1 %v733_v19 }
  0x16   :  { %678 = vmatprep.subr.bf16.mxu1 %v736_v22 }
  0x17   :  { %657 = vmatpush3.bf16.msra.mxu0 %v735_v21 }
  0x18   :  { %658 = vmatprep.subr.bf16.mxu0 %v738_v24 }
  0x19   :  { %679 = vmatpush3.bf16.msra.mxu1 %v737_v23 }
  0x1a   :  { %680 = vmatprep.subr.bf16.mxu1 %v740_v26 }
  0x1b   :  { %659 = vmatpush3.bf16.msra.mxu0 %v739_v25 }
  0x1c   :  { %660 = vmatprep.subr.bf16.mxu0 %v742_v28 }
  0x1d   :  { %681 = vmatpush3.bf16.msra.mxu1 %v741_v27 }
  0x1e   :  { %682 = vmatprep.subr.bf16.mxu1 %v744_v31 }
  0x1f   :  { %661 = vmatpush3.bf16.msra.mxu0 %v743_v30 }
  0x20   :  { %690 = vmatprep.subr.bf16.mxu0 %v747_v37 }
  0x21   :  { %683 = vmatpush3.bf16.msra.mxu1 %v746_v36 }
  0x22   :  { %495 = vmatmul.mubr.bf16.vlgmr.msra.gmra.mrb[0].mxu0 %v144_v44 }
  0x23   :  { %691 = vmatpush3.bf16.msra.mxu0 %v748_v47  ;;  %574 = vmatprep.mubr.bf16.mxu0 %v165_v51 }
  0x24   :  { %535 = vmatmul.mubr.bf16.vlgmr.msra.gmra.mrb[0].mxu1 %v166_v48  ;;  %692 = vmatprep.subr.bf16.mxu0 %v749_v49 }
  0x25   :  { %8 = vsyncpa [#allocation3], 0  ;;  %v752_v54 = vld [vmem:[%s972_s1 + $0x110] sm:$0xff]   ;;  %v753_v55 = vld [vmem:[%s972_s1 + $0x158] sm:$0xff]   ;;  %v151_v1 = vrot.slane %v135_v42, %v127_v40 }
  0x26   :  { %v754_v56 = vld [vmem:[%s972_s1 + $0x118] sm:$0xff]   ;;  %v755_v57 = vld [vmem:[%s972_s1 + $0x160] sm:$0xff]   ;;  %v757_v59 = vld [vmem:[%s972_s1 + $0x168] sm:$0xff]  }
  0x27   :  { %693 = vmatpush3.bf16.msra.mxu0 %v750_v52  ;;  %v756_v58 = vld [vmem:[%s972_s1 + $0x120] sm:$0xff]   ;;  %v758_v60 = vld [vmem:[%s972_s1 + $0x128] sm:$0xff]   ;;  %v759_v61 = vld [vmem:[%s972_s1 + $0x170] sm:$0xff]  }
  0x28   :  { %694 = vmatprep.subr.bf16.mxu0 %v751_v53  ;;  %v760_v62 = vld [vmem:[%s972_s1 + $0x130] sm:$0xff]   ;;  %v761_v63 = vld [vmem:[%s972_s1 + $0x178] sm:$0xff]   ;;  %v597_v3 = vld [vmem:[%s973_s2] ss:$0 sm:$0xff] }
  0x29   :  { %v762_v0 = vld [vmem:[%s972_s1 + $0x138] sm:$0xff]   ;;  %s788_s1 = smov [#allocation2]  }
  0x2a   :  { %s589_s29 = sshll.u32 %s788_s1, 4  ;;  %s590_s29 = int_to_ptr.vmem [resolvable:$true] %s589_s29 }
  0x2b   :  { %695 = vmatpush3.bf16.msra.mxu0 %v752_v54  ;;  %s763_s2 = scalar_lea.vmem %s590_s29, 32  ;;  %p768_p1 = scmp.lt.s32.totalorder %s590_s29, %s590_s29 }
  0x2c   :  { %696 = vmatprep.subr.bf16.mxu0 %v753_v55  ;;  %p764_p0 = scmp.ne.s32.totalorder %s590_s29, %s763_s2  ;;  %p769_p2 = scmp.lt.s32.totalorder %s763_s2, %s763_s2 }
  0x2e   :  { %p770_p3 = por %p769_p2, %p768_p1 }
  0x2f   :  { %697 = vmatpush3.bf16.msra.mxu0 %v754_v56 }
  0x30   :  { %698 = vmatprep.subr.bf16.mxu0 %v755_v57  ;;  %p771_p4 = pnand %p770_p3, %p764_p0 }
  0x33   :  { %699 = vmatpush3.bf16.msra.mxu0 %v756_v58 }
  0x34   :  { %700 = vmatprep.subr.bf16.mxu0 %v757_v59 }
  0x37   :  { %701 = vmatpush3.bf16.msra.mxu0 %v758_v60 }
  0x38   :  { %702 = vmatprep.subr.bf16.mxu0 %v759_v61 }
  0x3b   :  { %703 = vmatpush3.bf16.msra.mxu0 %v760_v62 }
  0x3c   :  { %704 = vmatprep.subr.bf16.mxu0 %v761_v63 }
  0x3f   :  { %705 = vmatpush3.bf16.msra.mxu0 %v762_v0 }
  0x42   :  { %575 = vmatmul.mubr.bf16.vlgmr.msra.gmra.mrb[4].mxu0 %v151_v1 }
  0xf5   :  { %v662_v2 = vpop.f32.mrb[0].mxu0 }
  0xf6   :  { %v663_v4 = vpop.f32.mrb[1].mxu0 }
  0xf7   :  { %v664_v5 = vadd.f32 %v663_v4, %v662_v2  ;;  %v665_v6 = vpop.f32.mrb[2].mxu0  ;;  %v684_v7 = vpop.f32.mrb[0].mxu1 }
  0xf8   :  { %v666_v8 = vpop.f32.mrb[3].mxu0  ;;  %v685_v9 = vpop.f32.mrb[1].mxu1 }
  0xf9   :  { %v497_v10 = vadd.f32 %v664_v5, %v597_v3  ;;  %v686_v11 = vadd.f32 %v685_v9, %v684_v7  ;;  %v687_v12 = vpop.f32.mrb[2].mxu1 }
  0xfa   :  { %v688_v13 = vpop.f32.mrb[3].mxu1 }
  0xfb   :  { %v537_v14 = vadd.f32 %v686_v11, %v497_v10 }
 0x115   :  { %v706_v15 = vpop.f32.mrb[4].mxu0 }
 0x116   :  { %v707_v16 = vpop.f32.mrb[5].mxu0 }
 0x117   :  { %v708_v17 = vadd.f32 %v707_v16, %v706_v15  ;;  %v709_v18 = vpop.f32.mrb[6].mxu0 }
 0x118   :  { %v710_v19 = vpop.f32.mrb[7].mxu0 }
 0x119   :  { %v577_v20 = vadd.f32 %v708_v17, %v537_v14 }
 0x11b   :  { %582 = vst [vmem:[#allocation2] sm:$0x3] %v577_v20 }
 0x11c   :  { %774 = shalt.err (!%p771_p4)
}
 0x11d   :  { %s775_s5 = scalar_lea.hbm %s974_s3, 32 }
 0x11e   :  { %p776_p5 = scmp.ne.s32.totalorder %s974_s3, %s775_s5  ;;  %p779_p6 = scmp.lt.u32.totalorder %s775_s5, %s974_s3 }
 0x120   :  { %p781_p7 = pnand %p779_p6, %p776_p5 }
 0x122   :  { %784 = shalt.err (!%p781_p7)
}
 0x123   :  { %592 = dma.vmem_to_hbm [thread:$0]  %s590_s29, 32, %s974_s3, [#allocation3]  }
 0x124   :  { %785 = dma.done.wait [#allocation3], 32  }
 0x125   :  { %786 = vsyncadd [#allocation3], 4294967264 }
 0x126   :  { %596 = vsyncpa [#allocation3], 1 }

</bundles_post_ra>
